<compile_context>
chip_gen: v6e
topology: v6e:2x2x1
jax: 0.10.0
libtpu: 0.0.40
codegen_flags: <defaults>
</compile_context>

<pallas_src>
from functools import partial

import jax
import jax.numpy as jnp
from jax.experimental import pallas as pl
from jax.experimental.pallas import tpu as pltpu


def _slice_mask_kernel(mask_value, emit_mask, x_ref, m_ref, sample_ref,
                       *maybe_mask_ref):
    # x_ref:      (1, TC, TL)  input tile
    # m_ref:      (1, 1,  TL)  keep mask (already expanded over W), bcast TC
    # sample_ref: (1, TC, TL)  masked sample tile
    x = x_ref[...]
    m = m_ref[...]                               # implicit broadcast over TC
    if mask_value == 0.0:
        sample_ref[...] = x * m                  # x*m + (1-m)*0 == x*m
    else:
        # exact reference formula (keeps NaN/Inf propagation identical)
        sample_ref[...] = x * m + (1.0 - m) * mask_value
    if emit_mask:
        maybe_mask_ref[0][...] = jnp.broadcast_to(m, sample_ref.shape)


def _default_target_block_bytes():
    """Per-generation block-size target (bytes) for this streaming kernel."""
    try:
        kind = jax.devices()[0].device_kind.lower()
    except Exception:
        return 2 << 20
    if "v5 lite" in kind or "v5e" in kind or "v5lite" in kind:
        return 1 << 20          # v5e: 16 MiB scoped-VMEM default, 0.82 TB/s
    if "7" in kind:
        return 4 << 20          # v7x: amortize ~0.35 us/step vs 3.2 TB/s
    return 2 << 20              # v6e knee (~85%+ of HBM roofline)


def _pick_tiles(c, l, itemsize, target_bytes, *, total_bytes,
                min_grid_steps=8):
    """Pick (TC, TL) for (1, TC, TL) blocks of a (B, C, L) array.

    TC is a multiple of 8 dividing C (or C itself); TL is a multiple of 128
    dividing L (or L itself) — the TPU (8, 128) block constraint.  Prefers
    full-L slabs and tiles C first; soft-caps the block so the grid keeps
    >= min_grid_steps steps (legality constraints always win).
    """
    if min_grid_steps:
        target_bytes = min(target_bytes,
                           max(itemsize, total_bytes // min_grid_steps))

    def legal(dim, align):
        opts = [d for d in range(align, dim, align) if dim % d == 0]
        opts.append(dim)                         # full dim is always legal
        return opts

    def fit(opts, bytes_per_unit):
        ok = [o for o in opts if o * bytes_per_unit <= target_bytes]
        return max(ok) if ok else min(opts)

    c_opts = legal(c, 8)
    l_opts = legal(l, 128)

    tc_min = min(c_opts)
    if tc_min * l * itemsize <= target_bytes:
        return fit(c_opts, l * itemsize), l      # tile C, keep fused L whole
    return tc_min, fit(l_opts, tc_min * itemsize)  # minimal TC, tile L


def slice_random_mask_apply(x, slice_mask, mask_value=0.0, *,
                            return_expanded_mask=True,
                            donate_x=False,
                            target_block_bytes=None,
                            min_grid_steps=8):
    """Applies a (B, S) per-slice keep mask to x of shape (B, C, S, W).

    Returns (sample, mask, mask_amount) matching SliceMaskOutput:
      sample      = x * mask + (1 - mask) * mask_value        (Pallas kernel)
      mask        = expanded (B, C, S, W) mask (co-streamed kernel output) if
                    return_expanded_mask else the compact (B, S) mask
      mask_amount = kept fraction per batch, float32
    """
    b, c, s, w = x.shape
    l = s * w
    itemsize = jnp.dtype(x.dtype).itemsize
    if target_block_bytes is None:
        target_block_bytes = _default_target_block_bytes()

    tc, tl = _pick_tiles(c, l, itemsize, target_block_bytes,
                         total_bytes=b * c * l * itemsize,
                         min_grid_steps=min_grid_steps)
    grid = (b, c // tc, l // tl)

    # Free contiguous merge of (S, W) -> L for x; tiny (C x smaller than x)
    # materialization of the mask expanded over W.
    xf = x.reshape(b, c, l)
    mf = jnp.broadcast_to(slice_mask.astype(x.dtype)[:, :, None],
                          (b, s, w)).reshape(b, 1, l)

    out_shapes = [jax.ShapeDtypeStruct((b, c, l), x.dtype)]
    out_specs = [pl.BlockSpec((1, tc, tl), lambda bi, ci, li: (bi, ci, li))]
    if return_expanded_mask:
        out_shapes.append(jax.ShapeDtypeStruct((b, c, l), x.dtype))
        out_specs.append(
            pl.BlockSpec((1, tc, tl), lambda bi, ci, li: (bi, ci, li)))

    block_bytes = tc * tl * itemsize
    n_big_streams = 3 if return_expanded_mask else 2
    vmem_limit = int(2 * n_big_streams * block_bytes
                     + 2 * tl * itemsize + (4 << 20))
    vmem_limit = max(vmem_limit, 16 << 20)

    kernel = partial(_slice_mask_kernel, float(mask_value),
                     return_expanded_mask)
    outs = pl.pallas_call(
        kernel,
        out_shape=tuple(out_shapes),
        grid=grid,
        in_specs=[
            pl.BlockSpec((1, tc, tl), lambda bi, ci, li: (bi, ci, li)),
            pl.BlockSpec((1, 1, tl), lambda bi, ci, li: (bi, 0, li)),
        ],
        out_specs=tuple(out_specs),
        compiler_params=pltpu.CompilerParams(
            dimension_semantics=("parallel", "parallel", "parallel"),
            vmem_limit_bytes=vmem_limit),
        input_output_aliases=({0: 0} if donate_x else {}),
    )(xf, mf)

    sample = outs[0].reshape(b, c, s, w)
    if return_expanded_mask:
        mask_out = outs[1].reshape(b, c, s, w)
    else:
        mask_out = slice_mask.astype(x.dtype)    # compact (B, S)
    # Exact slice counts (f32 reduce on the compact mask), matching
    # mask[:, 0, :, 0].sum(-1) / x.shape[2].
    mask_amount = slice_mask.astype(jnp.float32).sum(axis=-1) / s
    return sample, mask_out, mask_amount


def generate_random_slice_mask(key, batch_size, sinogram_size, keep_min,
                               keep_max, dtype=jnp.float32):
    """Per-batch: keep ~ U[keep_min, keep_max] random slices are kept."""
    # TODO(synk): the exact torch.Generator(manual_seed(0)) sequence is not
    # reproducible in JAX; the semantics (random #kept slices, random slice
    # ids per batch) are reproduced with jax.random instead.
    k1, k2 = jax.random.split(key)
    keep = jax.random.randint(k1, (batch_size,), keep_min, keep_max + 1)
    scores = jax.random.uniform(k2, (batch_size, sinogram_size))
    ranks = jnp.argsort(jnp.argsort(scores, axis=-1), axis=-1)
    return (ranks < keep[:, None]).astype(dtype)


if __name__ == "__main__":
    b, c, s, w = 2, 4, 16, 16
    keep_min, keep_max = 4, 12

    key = jax.random.PRNGKey(0)
    kx, km = jax.random.split(key)
    x = jax.random.normal(kx, (b, c, s, w), dtype=jnp.float32)
    slice_mask = generate_random_slice_mask(km, b, s, keep_min, keep_max)

    # Pure-JAX reference of SliceRandomMask.apply_mask semantics.
    mask_ref_full = jnp.broadcast_to(slice_mask[:, None, :, None],
                                     x.shape).astype(x.dtype)

    for mask_value in (0.0, -1.0):
        for expanded in (True, False):
            sample, mask, mask_amount = slice_random_mask_apply(
                x, slice_mask, mask_value, return_expanded_mask=expanded)
            jax.block_until_ready((sample, mask, mask_amount))

            ref_sample = x * mask_ref_full + (1.0 - mask_ref_full) * mask_value
            ref_amt = mask_ref_full[:, 0, :, 0].sum(axis=-1) / s

            assert sample.shape == x.shape
            assert jnp.allclose(sample, ref_sample, atol=1e-6)
            if expanded:
                assert mask.shape == x.shape
                assert jnp.allclose(mask, mask_ref_full, atol=1e-6)
            else:
                assert mask.shape == (b, s)
                assert jnp.allclose(mask, slice_mask.astype(x.dtype))
            assert mask_amount.shape == (b,)
            assert jnp.allclose(mask_amount, ref_amt, atol=1e-6)

    print("KERNEL_OK")
</pallas_src>

<mosaic_0001>
module attributes {stable_mosaic.version = 11 : i64} {
  func.func @_slice_mask_kernel(%arg0: i32, %arg1: i32, %arg2: i32, %arg3: memref<1x4x128xf32, #tpu.memory_space<vmem>>, %arg4: memref<1x1x128xf32, #tpu.memory_space<vmem>>, %arg5: memref<1x4x128xf32, #tpu.memory_space<vmem>>, %arg6: memref<1x4x128xf32, #tpu.memory_space<vmem>>) attributes {dimension_semantics = [#tpu.dimension_semantics<parallel>, #tpu.dimension_semantics<parallel>, #tpu.dimension_semantics<parallel>], iteration_bounds = array<i64: 2, 1, 2>, scalar_prefetch = 0 : i64, scratch_operands = 0 : i64, tpu.core_type = #tpu.core_type<tc>, window_params = [{transform_indices = @transform_0, window_bounds = array<i64: 1, 4, 128>}, {transform_indices = @transform_1, window_bounds = array<i64: 1, 1, 128>}, {transform_indices = @transform_2, window_bounds = array<i64: 1, 4, 128>}, {transform_indices = @transform_3, window_bounds = array<i64: 1, 4, 128>}]} {
    %c0 = arith.constant 0 : index
    %c0_0 = arith.constant 0 : index
    %c0_1 = arith.constant 0 : index
    %0 = vector.load %arg3[%c0, %c0_0, %c0_1] : memref<1x4x128xf32, #tpu.memory_space<vmem>>, vector<1x4x128xf32>
    %c0_2 = arith.constant 0 : index
    %c0_3 = arith.constant 0 : index
    %c0_4 = arith.constant 0 : index
    %1 = vector.load %arg4[%c0_2, %c0_3, %c0_4] : memref<1x1x128xf32, #tpu.memory_space<vmem>>, vector<1x1x128xf32>
    %2 = vector.broadcast %1 : vector<1x1x128xf32> to vector<1x4x128xf32>
    %3 = arith.mulf %0, %2 : vector<1x4x128xf32>
    %c0_5 = arith.constant 0 : index
    %c0_6 = arith.constant 0 : index
    %c0_7 = arith.constant 0 : index
    %4 = vector.load %arg5[%c0_5, %c0_6, %c0_7] : memref<1x4x128xf32, #tpu.memory_space<vmem>>, vector<1x4x128xf32>
    tpu.vector_store %arg5[%c0_5, %c0_6, %c0_7], %3 {strides = array<i32>} : memref<1x4x128xf32, #tpu.memory_space<vmem>>, vector<1x4x128xf32>,
    %5 = vector.shape_cast %1 : vector<1x1x128xf32> to vector<1x1x128xf32>
    %6 = vector.broadcast %5 : vector<1x1x128xf32> to vector<1x4x128xf32>
    %c0_8 = arith.constant 0 : index
    %c0_9 = arith.constant 0 : index
    %c0_10 = arith.constant 0 : index
    %7 = vector.load %arg6[%c0_8, %c0_9, %c0_10] : memref<1x4x128xf32, #tpu.memory_space<vmem>>, vector<1x4x128xf32>
    tpu.vector_store %arg6[%c0_8, %c0_9, %c0_10], %6 {strides = array<i32>} : memref<1x4x128xf32, #tpu.memory_space<vmem>>, vector<1x4x128xf32>,
    return
  }
  func.func @transform_0(%arg0: i32, %arg1: i32, %arg2: i32) -> (i32, i32, i32) {
    %c0_i32 = arith.constant 0 : i32
    return %arg0, %arg1, %arg2 : i32, i32, i32
  }
  func.func @transform_1(%arg0: i32, %arg1: i32, %arg2: i32) -> (i32, i32, i32) {
    %c0_i32 = arith.constant 0 : i32
    %c0_i32_0 = arith.constant 0 : i32
    return %arg0, %c0_i32, %arg2 : i32, i32, i32
  }
  func.func @transform_2(%arg0: i32, %arg1: i32, %arg2: i32) -> (i32, i32, i32) {
    %c0_i32 = arith.constant 0 : i32
    return %arg0, %arg1, %arg2 : i32, i32, i32
  }
  func.func @transform_3(%arg0: i32, %arg1: i32, %arg2: i32) -> (i32, i32, i32) {
    %c0_i32 = arith.constant 0 : i32
    return %arg0, %arg1, %arg2 : i32, i32, i32
  }
}

</mosaic_0001>

<bundles_post_ra>
// kernel: tpu_custom_call.1
= control target key start
LH: loop header
LB: loop body
LE: loop exit
PB: predicated region body
PF: predicated region fallthrough
CT: control target
= control target key end

     0   :  { %s1031_s0 = inlined_call_operand.hbm [shape: f32[2,4,256], index: 0, kind: input, shape index: {}]   ;;  %s1032_s1 = inlined_call_operand.hbm [shape: f32[2,1,256], index: 1, kind: input, shape index: {}]   ;;  %s1033_s2 = inlined_call_operand.hbm [shape: f32[2,4,256], index: 2, kind: output, shape index: {0}]   ;;  %s1034_s3 = inlined_call_operand.hbm [shape: f32[2,4,256], index: 3, kind: output, shape index: {1}]  }
   0x1   :  { %1036 = sst [smem:[#allocation15_spill]] %s1031_s0 }
   0x2   :  { %9 = vsyncpa [#allocation3], 0 }
   0x3   :  { %11 = vsyncpa [#allocation3 + $0x1], 0 }
   0x4   :  { %12 = vsyncpa [#allocation6], 0 }
   0x5   :  { %14 = vsyncpa [#allocation6 + $0x1], 0 }
   0x6   :  { %15 = vsyncpa [#allocation4], 0 }
   0x7   :  { %17 = vsyncpa [#allocation4 + $0x1], 0 }
   0x8   :  { %18 = vsyncpa [#allocation9], 0 }
   0x9   :  { %20 = vsyncpa [#allocation9 + $0x1], 0  ;;  %s793_s12 = smov 0   ;;  %s795_s13 = smov 0  }
   0xa   :  { %s797_s14 = smov 0   ;;  %s799_s15 = smov 0  }
   0xb   :  { %s801_s16 = smov 0   ;;  %s803_s17 = smov 0  }
   0xc   :  { %s805_s18 = smov 0   ;;  %s807_s19 = smov 0  }
   0xd LB: > { %s471_s20 = sadd.s32 4294967295, %s767_s19   ;;  %s472_s21 = sadd.s32 4294967294, %s767_s19   ;;  %s767_s19 = sphi %s807_s19, %s26_s19   ;;  %s763_s18 = sphi %s805_s18, %s1052_s18   ;;  %s759_s17 = sphi %s803_s17, %s1051_s17   ;;  %s755_s16 = sphi %s801_s16, %s1050_s16   ;;  %s751_s15 = sphi %s799_s15, %s1049_s15   ;;  %s747_s14 = sphi %s797_s14, %s1048_s14   ;;  %s743_s13 = sphi %s795_s13, %s1047_s13   ;;  %s739_s12 = sphi %s793_s12, %s1046_s12  }
   0xe   : > { %s38_s22 = sadd.s32 1, %s759_s17  ;;  %s45_s23 = sadd.s32 1, %s763_s18 }
   0xf   : > { %p39_p0 = scmp.ge.s32.totalorder %s38_s22, 2  ;;  %s56_s24 = sadd.s32 1, %s747_s14 }
  0x10   : > { %p63_p1 = scmp.ne.s32.totalorder %s747_s14, %s743_s13  ;;  %p64_p2 = scmp.eq.s32.totalorder %s767_s19, 0 }
  0x11   : > { %s1054_s22 = smov (%p39_p0, %s38_s22), 0  ;;  %s1056_s23 = smov (!%p39_p0, %s45_s23), %s763_s18 }
  0x12   : > { %s52_s25 = ssub.s32 %s759_s17, %s1054_s22  ;;  %p846_p3 = por %p64_p2, %p63_p1 }
  0x13   : > { %p47_p4 = scmp.ge.s32.totalorder %s1056_s23, 2  ;;  %p69_p5 = scmp.ne.s32.totalorder %s743_s13, %s739_s12 }
  0x14   : > { %p70_p6 = scmp.eq.s32.totalorder %s471_s20, 0  ;;  %p125_p7 = scmp.eq.s32.totalorder %s471_s20, 3 }
  0x15   : > { %s1058_s23 = smov (%p47_p4, %s1056_s23), 0  ;;  %p131_p10 = scmp.eq.s32.totalorder %s472_s21, 3 }
  0x16   : > { %1038 = sst [smem:[#allocation14_spill]] %s1058_s23  ;;  %p854_p8 = por %p70_p6, %p69_p5 }
  0x17   : > { %p858_p9 = por %p125_p7, %p63_p1  ;;  %s49_s29 = ssub.s32 %s763_s18, %s1058_s23 }
  0x18   : > { %s53_s30 = sor.u32 %s52_s25, %s49_s29  ;;  %p864_p12 = por %p131_p10, %p69_p5 }
  0x19   : > { %p54_p11 = scmp.eq.s32.totalorder %s53_s30, 0  ;;  %p515_p13 = scmp.lt.s32.totalorder %s767_s19, 4 }
  0x1a   : > { %s870_s5 = sand.u32 1, %s747_s14   ;;  %s476_s8 = sshll.u32 %s763_s18, 1 }
  0x1b   : > { %s873_s6 = scalar_select %p54_p11, %s747_s14, %s56_s24  }
  0x1c   : > { %s475_s7 = sshll.u32 %s870_s5, 2  ;;  %s878_s9 = sadd.s32 %s759_s17, %s476_s8 }
  0x1d   : > { %s185_s10 = scalar_lea.vmem [#allocation2], %s475_s7  ;;  %s477_s20 = sshll.u32 %s878_s9, 6 }
  0x1e   : > { %s196_s11 = sshll.u32 %s185_s10, 4  ;;  %s1042_s0 = sld [smem:[#allocation15_spill]]  ;;  %s197_s11 = int_to_ptr.vmem [resolvable:$true] %s196_s11 }
  0x1f   : > { %p886_p0 = pnand %p515_p13, %p846_p3  ;;  %p480_p1 = scmp.ge.s32.totalorder %s767_s19, 1 }
  0x20   : > { %p220_p2 = scmp.lt.s32.totalorder %s767_s19, 5  ;;  %s182_s24 = scalar_lea.sflag [#allocation3], %s870_s5 }
  0x21   : > { %p583_p4 = pneg %p886_p0  ;;  %s594_s7 = scalar_lea.vmem %s197_s11, 64 }
  0x22   : > { %p595_p5 = scmp.ne.s32.totalorder %s197_s11, %s594_s7  ;;  %s769_s8 = smov [#allocation2]  }
  0x23   : > { %s599_s10 = sshll.u32 %s769_s8, 4  ;;  %s600_s10 = int_to_ptr.vmem [resolvable:$false] %s599_s10 }
  0x24   : > { %s194_s29 = scalar_lea.hbm %s1042_s0, %s477_s20  ;;  %p597_p6 = pnand %p595_p5, %p583_p4 }
  0x25   : > { %s601_s26 = scalar_lea.vmem %s600_s10, 128  ;;  %p602_p3 = scmp.lt.s32.totalorder %s197_s11, %s600_s10 }
  0x26   : > { %p598_p7 = pneg %p597_p6  ;;  %p603_p10 = scmp.lt.s32.totalorder %s601_s26, %s594_s7 }
  0x28   : > { %p604_p11 = por %p603_p10, %p602_p3 }
  0x2a   : > { %p605_p13 = pnand %p604_p11, %p598_p7 }
  0x2c   : > { %608 = shalt.err (!%p605_p13)
}
  0x2d   : > { %504 = dma.hbm_to_vmem [thread:$0]  (!%p886_p0), %s194_s29, 64, %s197_s11, %s182_s24  }
  0x2e   : > { %p904_p5 = pnand %p480_p1, %p220_p2  ;;  %s479_s21 = sshll.u32 %s878_s9, 4 }
  0x2f   : > { %s206_s25 = scalar_lea.vmem [#allocation5], %s870_s5  ;;  %s213_s26 = scalar_lea.hbm %s1032_s1, %s479_s21 }
  0x30   : > { %s215_s7 = sshll.u32 %s206_s25, 4  ;;  %s204_s0 = scalar_lea.sflag [#allocation6], %s870_s5  ;;  %s216_s7 = int_to_ptr.vmem [resolvable:$true] %s215_s7 }
  0x31   : > { %s622_s23 = scalar_lea.vmem %s216_s7, 16  ;;  %s770_s11 = smov [#allocation5]  }
  0x32   : > { %p623_p6 = scmp.ne.s32.totalorder %s216_s7, %s622_s23  ;;  %s627_s29 = sshll.u32 %s770_s11, 4  ;;  %s628_s29 = int_to_ptr.vmem [resolvable:$false] %s627_s29 }
  0x33   : > { %s629_s24 = scalar_lea.vmem %s628_s29, 32  ;;  %p630_p1 = scmp.lt.s32.totalorder %s216_s7, %s628_s29 }
  0x34   : > { %p625_p7 = pnand %p623_p6, %p583_p4  ;;  %p631_p2 = scmp.lt.s32.totalorder %s629_s24, %s622_s23 }
  0x36   : > { %p626_p3 = pneg %p625_p7  ;;  %p632_p10 = por %p631_p2, %p630_p1 }
  0x38   : > { %p633_p11 = pnand %p632_p10, %p626_p3 }
  0x3a   : > { %636 = shalt.err (!%p633_p11)
}
  0x3b   : > { %507 = dma.hbm_to_vmem [thread:$0]  (!%p886_p0), %s213_s26, 16, %s216_s7, %s204_s0  }
  0x3c   : > { %224 = sbr.rel (%p904_p5) target bundleno = 116 (0x74), region = 28  ;;  %s922_s5 = sand.u32 (!%p904_p5), 1, %s743_s13  }
  0x3d   : > { %s925_s9 = sshll.u32 (!%p904_p5), %s922_s5, 2  ;;  %s227_s21 = scalar_lea.sflag (!%p904_p5), [#allocation3], %s922_s5 }
  0x3e   : > { %s230_s23 = scalar_lea.vmem (!%p904_p5), [#allocation2], %s925_s9 }
  0x41   : > { %722 = dma.done.wait (%p854_p8), %s227_s21, 64  }
  0x42   : > { %724 = vsyncadd (%p854_p8), %s227_s21, 4294967232  ;;  %s236_s0 = scalar_lea.sflag [#allocation6], %s922_s5  ;;  %s238_s30 = scalar_lea.vmem [#allocation5], %s922_s5 }
  0x43   : > { %726 = dma.done.wait (%p854_p8), %s236_s0, 16  }
  0x44   : > { %728 = vsyncadd (%p854_p8), %s236_s0, 4294967280  ;;  %s269_s20 = scalar_lea.vmem [#allocation8], %s925_s9  ;;  %s487_s7 = sshll.u32 %s755_s16, 1  ;;  %v270_v0 = vld [vmem:[%s230_s23] sm:$0xf] }
  0x45   : > { %s321_s25 = sshll.u32 %s269_s20, 4  ;;  %s262_s8 = scalar_lea.vmem [#allocation7], %s925_s9  ;;  %v484_v1 = vld [vmem:[%s238_s30] ss:$0 sm:$0xff]  ;;  %s945_s25 = int_to_ptr.vmem [resolvable:$true] %s321_s25 }
  0x46   : > { %s304_s10 = sshll.u32 %s262_s8, 4  ;;  %s300_s26 = sadd.s32 %s751_s15, %s487_s7  ;;  %v278_v2 = vmul.f32 %v484_v1, %v270_v0  ;;  %280 = vst [vmem:[%s269_s20] sm:$0xf] %v484_v1  ;;  %s952_s10 = int_to_ptr.vmem [resolvable:$true] %s304_s10 }
  0x47   : > { %s488_s27 = sshll.u32 %s300_s26, 6  ;;  %s287_s0 = scalar_lea.sflag [#allocation9], %s922_s5 }
  0x48   : > { %s950_s24 = scalar_lea.hbm %s1034_s3, %s488_s27  ;;  %s957_s15 = scalar_lea.hbm %s1033_s2, %s488_s27 }
  0x49   : > { %s637_s7 = scalar_lea.vmem %s945_s25, 64  ;;  %s771_s26 = smov [#allocation8]  }
  0x4a   : > { %p638_p8 = scmp.ne.s32.totalorder %s945_s25, %s637_s7  ;;  %s641_s11 = sshll.u32 %s771_s26, 4  ;;  %s642_s11 = int_to_ptr.vmem [resolvable:$false] %s641_s11 }
  0x4b   : > { %s643_s23 = scalar_lea.vmem %s642_s11, 128  ;;  %p644_p13 = scmp.lt.s32.totalorder %s945_s25, %s642_s11 }
  0x4c   : > { %p639_p0 = pnand %p638_p8, %p858_p9  ;;  %p645_p5 = scmp.lt.s32.totalorder %s643_s23, %s637_s7 }
  0x4e   : > { %p640_p4 = pneg %p639_p0  ;;  %p646_p6 = por %p645_p5, %p644_p13 }
  0x50   : > { %p647_p7 = pnand %p646_p6, %p640_p4 }
  0x52   : > { %650 = shalt.err (!%p647_p7)
}
  0x53   : > { %s651_s30 = scalar_lea.hbm %s950_s24, 64  ;;  %s655_s29 = scalar_lea.hbm %s1034_s3, 256 }
  0x54   : > { %p652_p3 = scmp.ne.s32.totalorder %s950_s24, %s651_s30  ;;  %p656_p10 = scmp.lt.s32.totalorder %s950_s24, %s1034_s3 }
  0x55   : > { %p657_p11 = scmp.lt.s32.totalorder %s655_s29, %s651_s30 }
  0x56   : > { %p653_p1 = pnand %p652_p3, %p858_p9 }
  0x57   : > { %p658_p8 = por %p657_p11, %p656_p10 }
  0x58   : > { %p654_p2 = pneg %p653_p1 }
  0x5a   : > { %p659_p0 = pnand %p658_p8, %p654_p2 }
  0x5c   : > { %662 = shalt.err (!%p659_p0)
}
  0x5d   : > { %498 = dma.vmem_to_hbm [thread:$0]  (%p858_p9), %s945_s25, 64, %s950_s24, %s287_s0   ;;  %279 = vst [vmem:[%s262_s8] sm:$0xf] %v278_v2 }
  0x5e   : > { %s282_s7 = scalar_lea.sflag [#allocation4], %s922_s5  ;;  %s663_s26 = scalar_lea.vmem %s952_s10, 64 }
  0x5f   : > { %p664_p4 = scmp.ne.s32.totalorder %s952_s10, %s663_s26  ;;  %s772_s11 = smov [#allocation7]  }
  0x60   : > { %s667_s23 = sshll.u32 %s772_s11, 4  ;;  %s668_s23 = int_to_ptr.vmem [resolvable:$false] %s667_s23 }
  0x61   : > { %p665_p13 = pnand %p664_p4, %p858_p9  ;;  %s669_s30 = scalar_lea.vmem %s668_s23, 128 }
  0x62   : > { %p670_p6 = scmp.lt.s32.totalorder %s952_s10, %s668_s23  ;;  %p671_p7 = scmp.lt.s32.totalorder %s669_s30, %s663_s26 }
  0x63   : > { %p666_p5 = pneg %p665_p13 }
  0x64   : > { %p672_p3 = por %p671_p7, %p670_p6 }
  0x66   : > { %p673_p1 = pnand %p672_p3, %p666_p5 }
  0x68   : > { %676 = shalt.err (!%p673_p1)
}
  0x69   : > { %s677_s9 = scalar_lea.hbm %s957_s15, 64  ;;  %s681_s8 = scalar_lea.hbm %s1033_s2, 256 }
  0x6a   : > { %p678_p2 = scmp.ne.s32.totalorder %s957_s15, %s677_s9  ;;  %p682_p8 = scmp.lt.s32.totalorder %s957_s15, %s1033_s2 }
  0x6b   : > { %p683_p0 = scmp.lt.s32.totalorder %s681_s8, %s677_s9 }
  0x6c   : > { %p679_p10 = pnand %p678_p2, %p858_p9 }
  0x6d   : > { %p684_p4 = por %p683_p0, %p682_p8 }
  0x6e   : > { %p680_p11 = pneg %p679_p10 }
  0x70   : > { %p685_p13 = pnand %p684_p4, %p680_p11 }
  0x72   : > { %688 = shalt.err (!%p685_p13)
}
  0x73   : > { %497 = dma.vmem_to_hbm [thread:$0]  (%p858_p9), %s952_s10, 64, %s957_s15, %s282_s7  }
  0x74 PF: > { %p516_p5 = scmp.ge.s32.totalorder %s767_s19, 2  ;;  %s333_s20 = sand.u32 1, %s739_s12  }
  0x75   : > { %s334_s27 = scalar_lea.sflag [#allocation4], %s333_s20 }
  0x76   : > { %p509_p6 = pnand %p516_p5, %p864_p12 }
  0x78   : > { %p510_p7 = pneg %p509_p6 }
  0x7a   : > { %730 = dma.done.wait (%p510_p7), %s334_s27, 64  }
  0x7b   : > { %732 = vsyncadd (%p510_p7), %s334_s27, 4294967232  ;;  %s343_s29 = scalar_lea.sflag [#allocation9], %s333_s20 }
  0x7c   : > { %734 = dma.done.wait (%p510_p7), %s343_s29, 64  }
  0x7d   : > { %736 = vsyncadd (%p510_p7), %s343_s29, 4294967232  ;;  %s26_s19 = sadd.s32 1, %s767_s19   ;;  %s1045_s28 = sld [smem:[#allocation14_spill]] }
  0x7e   : > { %p23_p3 = scmp.ge.s32.totalorder %s26_s19, 6   ;;  %s1046_s12 = smov %s743_s13 }
  0x7f   : > { %s1047_s13 = smov %s747_s14  ;;  %s1048_s14 = smov %s873_s6 }
  0x80   : > { %s1049_s15 = smov %s759_s17  ;;  %s1050_s16 = smov %s763_s18 }
  0x81   : > { %s1051_s17 = smov %s1054_s22  ;;  %25 = sbr.rel (!%p23_p3) target bundleno = 13 (0xd), region = 103 }
  0x83   : > { %s1052_s18 = smov %s1045_s28 }
  0x86   :  { %348 = vsyncpa [#allocation3], 1 }
  0x87   :  { %350 = vsyncpa [#allocation3 + $0x1], 1 }
  0x88   :  { %351 = vsyncpa [#allocation6], 1 }
  0x89   :  { %353 = vsyncpa [#allocation6 + $0x1], 1 }
  0x8a   :  { %354 = vsyncpa [#allocation4], 1 }
  0x8b   :  { %356 = vsyncpa [#allocation4 + $0x1], 1 }
  0x8c   :  { %357 = vsyncpa [#allocation9], 1 }
  0x8d   :  { %359 = vsyncpa [#allocation9 + $0x1], 1 }

</bundles_post_ra>
